<compile_context>
chip_gen: v7x
topology: tpu7x:2x2x1
jax: 0.10.0
libtpu: 0.0.40
codegen_flags: <defaults>
</compile_context>

<pallas_src>
import functools

import jax
import jax.numpy as jnp
from jax.experimental import pallas as pl
from jax.experimental.pallas import tpu as pltpu

BN_EPS = 1e-5


# ---------------- in-kernel math helpers ----------------

def _softplus(x):
    # numerically stable softplus = log(1 + exp(x))
    return jnp.logaddexp(x, 0.0)


def _batchnorm(x):
    # BatchNorm1d(affine=False), train mode: normalize over the batch axis (axis 0),
    # biased variance, eps = 1e-5.  One-pass stats: var = E[x^2] - E[x]^2.
    mean = jnp.mean(x, axis=0, keepdims=True)
    mean_sq = jnp.mean(x * x, axis=0, keepdims=True)
    var = jnp.maximum(mean_sq - mean * mean, 0.0)
    return (x - mean) * jax.lax.rsqrt(var + BN_EPS)


def _fast_recip(x):
    # EUP approximate reciprocal + one Newton-Raphson refinement step.
    r = pl.reciprocal(x, approx=True)
    return r * (2.0 - x * r)


def _softmax_rows(x):
    m = jnp.max(x, axis=1, keepdims=True)
    e = jnp.exp(x - m)
    return e * _fast_recip(jnp.sum(e, axis=1, keepdims=True))


def _softmax_from_max(x, m):
    # softmax over rows with a caller-provided row max (already matching x's scale).
    e = jnp.exp(x - m)
    return e * _fast_recip(jnp.sum(e, axis=1, keepdims=True))


# ---------------- fused kernel: zeroshot inf_net + reparameterize + prodLDA decoder ----------------

def fused_kernel(xb_ref, w1_ref, b1_ref, w2_ref, b2_ref,
                 wz_ref, bz_ref, eps_ref, beta_ref,
                 stats_ref, wd_ref, recon_ref,
                 *, K, temp):
    inv_temp = 1.0 / temp

    # ---- inference network (zeroshot): softplus MLP on x_bert ----
    xb = xb_ref[...]                                     # bf16 (B, E)
    h = _softplus(jnp.dot(xb, w1_ref[...],
                          preferred_element_type=jnp.float32) + b1_ref[...])
    h = _softplus(jnp.dot(h.astype(jnp.bfloat16), w2_ref[...],
                          preferred_element_type=jnp.float32) + b2_ref[...])
    # TODO(synk): encoder dropout skipped (eval-mode identity).

    # fused f_mu / f_sigma projection: single (H, 2K) matmul, split, then BatchNorm.
    z = jnp.dot(h.astype(jnp.bfloat16), wz_ref[...],
                preferred_element_type=jnp.float32) + bz_ref[...]
    mu = _batchnorm(z[:, :K])
    log_sigma = _batchnorm(z[:, K:])

    std = jnp.exp(0.5 * log_sigma)
    sigma = std * std                                    # sigma = exp(log_sigma)

    # ---- reparameterize (two independent draws, matching the PyTorch forward) ----
    eps = eps_ref[...]                                   # (B, 2K) : [eps1 | eps2]
    z1 = mu + eps[:, :K] * std
    z2 = mu + eps[:, K:] * std

    theta = _softmax_rows(z1)                            # stays on-chip (never hits HBM)
    theta_kd = _softmax_rows(z2 * inv_temp)
    # TODO(synk): drop_theta (nn.Dropout) skipped -> eval-mode identity on theta.

    # pack the narrow (B, K) results into one lane-dense output slab.
    pieces = [mu, log_sigma, sigma, theta_kd]
    pad = stats_ref.shape[1] - 4 * K
    if pad:
        pieces.append(jnp.zeros((mu.shape[0], pad), jnp.float32))
    stats_ref[...] = jnp.concatenate(pieces, axis=1)

    # ---- decoder (prodLDA): theta @ beta -> BatchNorm -> two softmaxes with shared max ----
    logits = _batchnorm(jnp.dot(theta.astype(jnp.bfloat16), beta_ref[...],
                                preferred_element_type=jnp.float32))
    m = jnp.max(logits, axis=1, keepdims=True)           # one XLU row-max for both softmaxes
    wd_ref[...] = _softmax_from_max(logits, m)
    recon_ref[...] = _softmax_from_max(logits * inv_temp, m * inv_temp)


# ---------------- wrapper ----------------

_VMEM = pl.BlockSpec(memory_space=pltpu.MemorySpace.VMEM)


def decoder_network_forward(params, x, x_bert, eps1, eps2, temp=1.0):
    """Forward pass of DecoderNetwork (infnet='zeroshot', model_type='prodLDA')."""
    del x  # BoW input is unused by the zeroshot (contextual) inference network.
    B = x_bert.shape[0]
    K = params["beta"].shape[0]
    V = params["beta"].shape[1]

    # --- parameter / input prep (cheap; in a real deployment done once, not per call) ---
    w1 = params["w1"].astype(jnp.bfloat16)
    w2 = params["w2"].astype(jnp.bfloat16)
    w_z = jnp.concatenate([params["w_mu"], params["w_ls"]], axis=1).astype(jnp.bfloat16)
    b_z = jnp.concatenate([params["b_mu"], params["b_ls"]], axis=1)
    beta = params["beta"].astype(jnp.bfloat16)
    xb = x_bert.astype(jnp.bfloat16)
    eps = jnp.concatenate([eps1, eps2], axis=1)          # (B, 2K)

    P = ((4 * K + 127) // 128) * 128                      # lane-dense packed-output width

    stats, word_dist, recon = pl.pallas_call(
        functools.partial(fused_kernel, K=K, temp=float(temp)),
        out_shape=(
            jax.ShapeDtypeStruct((B, P), jnp.float32),    # [mu | log_sigma | sigma | theta_kd | pad]
            jax.ShapeDtypeStruct((B, V), jnp.float32),    # word_dist
            jax.ShapeDtypeStruct((B, V), jnp.float32),    # recon
        ),
        in_specs=[_VMEM] * 9,
        out_specs=(_VMEM,) * 3,
    )(xb, w1, params["b1"], w2, params["b2"], w_z, b_z, eps, beta)

    mu = stats[:, 0 * K:1 * K]
    log_sigma = stats[:, 1 * K:2 * K]
    sigma = stats[:, 2 * K:3 * K]
    theta_kd = stats[:, 3 * K:4 * K]

    return (params["prior_mean"], params["prior_variance"],
            mu, sigma, log_sigma, word_dist, theta_kd, recon)


def init_params(key, input_size, bert_size, n_components, hidden):
    """Deterministic synthetic parameter init (shapes follow the PyTorch module)."""
    ks = jax.random.split(key, 8)

    def lin(k, fan_in, fan_out):
        bound = (6.0 / (fan_in + fan_out)) ** 0.5
        kw, kb = jax.random.split(k)
        w = jax.random.uniform(kw, (fan_in, fan_out), jnp.float32, -bound, bound)
        b = jax.random.uniform(kb, (1, fan_out), jnp.float32, -0.05, 0.05)
        return w, b

    w1, b1 = lin(ks[0], bert_size, hidden)
    w2, b2 = lin(ks[1], hidden, hidden)
    w_mu, b_mu = lin(ks[2], hidden, n_components)
    w_ls, b_ls = lin(ks[3], hidden, n_components)

    # beta: xavier_uniform_, shape (n_components, input_size)
    beta_bound = (6.0 / (n_components + input_size)) ** 0.5
    beta = jax.random.uniform(ks[4], (n_components, input_size), jnp.float32,
                              -beta_bound, beta_bound)

    prior_mean = jnp.zeros((n_components,), jnp.float32)
    prior_variance = jnp.full((n_components,), 1.0 - 1.0 / n_components, jnp.float32)

    return dict(w1=w1, b1=b1, w2=w2, b2=b2,
                w_mu=w_mu, b_mu=b_mu, w_ls=w_ls, b_ls=b_ls,
                beta=beta, prior_mean=prior_mean, prior_variance=prior_variance)


if __name__ == "__main__":
    B = 8            # batch
    V = 128          # input_size (vocab)
    E = 64           # bert_size
    K = 16           # n_components
    H = 64           # hidden size of the inference MLP
    TEMP = 2.0

    key = jax.random.PRNGKey(0)
    kp, kx, kb, ke1, ke2 = jax.random.split(key, 5)

    params = init_params(kp, V, E, K, H)

    x = jax.random.uniform(kx, (B, V), jnp.float32)          # BoW (unused by zeroshot net)
    x_bert = jax.random.normal(kb, (B, E), jnp.float32)      # contextual embeddings
    eps1 = jax.random.normal(ke1, (B, K), jnp.float32)       # randn_like draw #1
    eps2 = jax.random.normal(ke2, (B, K), jnp.float32)       # randn_like draw #2

    outs = decoder_network_forward(params, x, x_bert, eps1, eps2, temp=TEMP)
    outs = jax.block_until_ready(outs)

    (prior_mean, prior_var, mu, sigma, log_sigma, word_dist, theta_kd, recon) = outs
    assert prior_mean.shape == (K,) and prior_var.shape == (K,)
    assert mu.shape == (B, K) and sigma.shape == (B, K) and log_sigma.shape == (B, K)
    assert word_dist.shape == (B, V) and recon.shape == (B, V) and theta_kd.shape == (B, K)
    # sigma must equal exp(log_sigma)
    assert jnp.allclose(sigma, jnp.exp(log_sigma), rtol=1e-4, atol=1e-5)
    # distributions sum to 1 (approx-reciprocal + Newton step -> tight but not exact)
    assert jnp.allclose(jnp.sum(word_dist, axis=1), 1.0, atol=1e-3)
    assert jnp.allclose(jnp.sum(theta_kd, axis=1), 1.0, atol=1e-3)
    assert jnp.allclose(jnp.sum(recon, axis=1), 1.0, atol=1e-3)
    assert bool(jnp.all(jnp.isfinite(word_dist))) and bool(jnp.all(jnp.isfinite(recon)))

    print("KERNEL_OK")
</pallas_src>

<mosaic_0001>
module attributes {stable_mosaic.version = 11 : i64} {
  func.func @fused_kernel(%arg0: memref<8x64xbf16, #tpu.memory_space<vmem>>, %arg1: memref<64x64xbf16, #tpu.memory_space<vmem>>, %arg2: memref<1x64xf32, #tpu.memory_space<vmem>>, %arg3: memref<64x64xbf16, #tpu.memory_space<vmem>>, %arg4: memref<1x64xf32, #tpu.memory_space<vmem>>, %arg5: memref<64x32xbf16, #tpu.memory_space<vmem>>, %arg6: memref<1x32xf32, #tpu.memory_space<vmem>>, %arg7: memref<8x32xf32, #tpu.memory_space<vmem>>, %arg8: memref<16x128xbf16, #tpu.memory_space<vmem>>, %arg9: memref<8x128xf32, #tpu.memory_space<vmem>>, %arg10: memref<8x128xf32, #tpu.memory_space<vmem>>, %arg11: memref<8x128xf32, #tpu.memory_space<vmem>>) attributes {dimension_semantics = [], scalar_prefetch = 0 : i64, scratch_operands = 0 : i64, tpu.core_type = #tpu.core_type<tc>} {
    %c0 = arith.constant 0 : index
    %c0_0 = arith.constant 0 : index
    %0 = vector.load %arg0[%c0, %c0_0] : memref<8x64xbf16, #tpu.memory_space<vmem>>, vector<8x64xbf16>
    %c0_1 = arith.constant 0 : index
    %c0_2 = arith.constant 0 : index
    %1 = vector.load %arg1[%c0_1, %c0_2] : memref<64x64xbf16, #tpu.memory_space<vmem>>, vector<64x64xbf16>
    %cst = arith.constant dense<0.000000e+00> : vector<8x64xf32>
    %2 = tpu.matmul %0, %1, %cst {dimension_numbers = #tpu.dot_dimension_numbers<[1], [0], [0], [1], [0, 0, 1, 1], [], []>} : vector<8x64xbf16>, vector<64x64xbf16>, vector<8x64xf32> -> vector<8x64xf32>
    %c0_3 = arith.constant 0 : index
    %c0_4 = arith.constant 0 : index
    %3 = vector.load %arg2[%c0_3, %c0_4] : memref<1x64xf32, #tpu.memory_space<vmem>>, vector<1x64xf32>
    %4 = vector.broadcast %3 : vector<1x64xf32> to vector<8x64xf32>
    %5 = arith.addf %2, %4 : vector<8x64xf32>
    %cst_5 = arith.constant 0.000000e+00 : f32
    %6 = vector.broadcast %cst_5 : f32 to vector<8x64xf32>
    %7 = arith.maximumf %5, %6 : vector<8x64xf32>
    %8 = vector.broadcast %cst_5 : f32 to vector<8x64xf32>
    %9 = arith.subf %5, %8 : vector<8x64xf32>
    %10 = arith.cmpf one, %9, %9 : vector<8x64xf32>
    %11 = vector.broadcast %cst_5 : f32 to vector<8x64xf32>
    %12 = arith.addf %5, %11 : vector<8x64xf32>
    %13 = math.absf %9 : vector<8x64xf32>
    %cst_6 = arith.constant 0.000000e+00 : f32
    %14 = vector.broadcast %cst_6 : f32 to vector<8x64xf32>
    %15 = arith.subf %14, %13 : vector<8x64xf32>
    %16 = math.exp %15 : vector<8x64xf32>
    %17 = math.log1p %16 : vector<8x64xf32>
    %18 = arith.addf %7, %17 : vector<8x64xf32>
    %19 = arith.select %10, %12, %18 : vector<8x64xi1>, vector<8x64xf32>
    %20 = arith.truncf %19 : vector<8x64xf32> to vector<8x64xbf16>
    %c0_7 = arith.constant 0 : index
    %c0_8 = arith.constant 0 : index
    %21 = vector.load %arg3[%c0_7, %c0_8] : memref<64x64xbf16, #tpu.memory_space<vmem>>, vector<64x64xbf16>
    %cst_9 = arith.constant dense<0.000000e+00> : vector<8x64xf32>
    %22 = tpu.matmul %20, %21, %cst_9 {dimension_numbers = #tpu.dot_dimension_numbers<[1], [0], [0], [1], [0, 0, 1, 1], [], []>} : vector<8x64xbf16>, vector<64x64xbf16>, vector<8x64xf32> -> vector<8x64xf32>
    %c0_10 = arith.constant 0 : index
    %c0_11 = arith.constant 0 : index
    %23 = vector.load %arg4[%c0_10, %c0_11] : memref<1x64xf32, #tpu.memory_space<vmem>>, vector<1x64xf32>
    %24 = vector.broadcast %23 : vector<1x64xf32> to vector<8x64xf32>
    %25 = arith.addf %22, %24 : vector<8x64xf32>
    %cst_12 = arith.constant 0.000000e+00 : f32
    %26 = vector.broadcast %cst_12 : f32 to vector<8x64xf32>
    %27 = arith.maximumf %25, %26 : vector<8x64xf32>
    %28 = vector.broadcast %cst_12 : f32 to vector<8x64xf32>
    %29 = arith.subf %25, %28 : vector<8x64xf32>
    %30 = arith.cmpf one, %29, %29 : vector<8x64xf32>
    %31 = vector.broadcast %cst_12 : f32 to vector<8x64xf32>
    %32 = arith.addf %25, %31 : vector<8x64xf32>
    %33 = math.absf %29 : vector<8x64xf32>
    %cst_13 = arith.constant 0.000000e+00 : f32
    %34 = vector.broadcast %cst_13 : f32 to vector<8x64xf32>
    %35 = arith.subf %34, %33 : vector<8x64xf32>
    %36 = math.exp %35 : vector<8x64xf32>
    %37 = math.log1p %36 : vector<8x64xf32>
    %38 = arith.addf %27, %37 : vector<8x64xf32>
    %39 = arith.select %30, %32, %38 : vector<8x64xi1>, vector<8x64xf32>
    %40 = arith.truncf %39 : vector<8x64xf32> to vector<8x64xbf16>
    %c0_14 = arith.constant 0 : index
    %c0_15 = arith.constant 0 : index
    %41 = vector.load %arg5[%c0_14, %c0_15] : memref<64x32xbf16, #tpu.memory_space<vmem>>, vector<64x32xbf16>
    %cst_16 = arith.constant dense<0.000000e+00> : vector<8x32xf32>
    %42 = tpu.matmul %40, %41, %cst_16 {dimension_numbers = #tpu.dot_dimension_numbers<[1], [0], [0], [1], [0, 0, 1, 1], [], []>} : vector<8x64xbf16>, vector<64x32xbf16>, vector<8x32xf32> -> vector<8x32xf32>
    %c0_17 = arith.constant 0 : index
    %c0_18 = arith.constant 0 : index
    %43 = vector.load %arg6[%c0_17, %c0_18] : memref<1x32xf32, #tpu.memory_space<vmem>>, vector<1x32xf32>
    %44 = vector.broadcast %43 : vector<1x32xf32> to vector<8x32xf32>
    %45 = arith.addf %42, %44 : vector<8x32xf32>
    %46 = vector.extract_strided_slice %45 {offsets = [0, 0], sizes = [8, 16], strides = [1, 1]} : vector<8x32xf32> to vector<8x16xf32>
    %cst_19 = arith.constant dense<0.000000e+00> : vector<16xf32>
    %47 = vector.multi_reduction <add>, %46, %cst_19 [0] : vector<8x16xf32> to vector<16xf32>
    %48 = vector.shape_cast %47 : vector<16xf32> to vector<1x16xf32>
    %cst_20 = arith.constant 8.000000e+00 : f32
    %49 = vector.broadcast %cst_20 : f32 to vector<1x16xf32>
    %50 = arith.divf %48, %49 : vector<1x16xf32>
    %51 = arith.mulf %46, %46 : vector<8x16xf32>
    %cst_21 = arith.constant dense<0.000000e+00> : vector<16xf32>
    %52 = vector.multi_reduction <add>, %51, %cst_21 [0] : vector<8x16xf32> to vector<16xf32>
    %53 = vector.shape_cast %52 : vector<16xf32> to vector<1x16xf32>
    %cst_22 = arith.constant 8.000000e+00 : f32
    %54 = vector.broadcast %cst_22 : f32 to vector<1x16xf32>
    %55 = arith.divf %53, %54 : vector<1x16xf32>
    %56 = arith.mulf %50, %50 : vector<1x16xf32>
    %57 = arith.subf %55, %56 : vector<1x16xf32>
    %cst_23 = arith.constant 0.000000e+00 : f32
    %58 = vector.broadcast %cst_23 : f32 to vector<1x16xf32>
    %59 = arith.maximumf %57, %58 : vector<1x16xf32>
    %60 = vector.broadcast %50 : vector<1x16xf32> to vector<8x16xf32>
    %61 = arith.subf %46, %60 : vector<8x16xf32>
    %cst_24 = arith.constant 9.99999974E-6 : f32
    %62 = vector.broadcast %cst_24 : f32 to vector<1x16xf32>
    %63 = arith.addf %59, %62 : vector<1x16xf32>
    %64 = math.rsqrt %63 : vector<1x16xf32>
    %65 = vector.broadcast %64 : vector<1x16xf32> to vector<8x16xf32>
    %66 = arith.mulf %61, %65 : vector<8x16xf32>
    %67 = vector.extract_strided_slice %45 {offsets = [0, 16], sizes = [8, 16], strides = [1, 1]} : vector<8x32xf32> to vector<8x16xf32>
    %cst_25 = arith.constant dense<0.000000e+00> : vector<16xf32>
    %68 = vector.multi_reduction <add>, %67, %cst_25 [0] : vector<8x16xf32> to vector<16xf32>
    %69 = vector.shape_cast %68 : vector<16xf32> to vector<1x16xf32>
    %cst_26 = arith.constant 8.000000e+00 : f32
    %70 = vector.broadcast %cst_26 : f32 to vector<1x16xf32>
    %71 = arith.divf %69, %70 : vector<1x16xf32>
    %72 = arith.mulf %67, %67 : vector<8x16xf32>
    %cst_27 = arith.constant dense<0.000000e+00> : vector<16xf32>
    %73 = vector.multi_reduction <add>, %72, %cst_27 [0] : vector<8x16xf32> to vector<16xf32>
    %74 = vector.shape_cast %73 : vector<16xf32> to vector<1x16xf32>
    %cst_28 = arith.constant 8.000000e+00 : f32
    %75 = vector.broadcast %cst_28 : f32 to vector<1x16xf32>
    %76 = arith.divf %74, %75 : vector<1x16xf32>
    %77 = arith.mulf %71, %71 : vector<1x16xf32>
    %78 = arith.subf %76, %77 : vector<1x16xf32>
    %cst_29 = arith.constant 0.000000e+00 : f32
    %79 = vector.broadcast %cst_29 : f32 to vector<1x16xf32>
    %80 = arith.maximumf %78, %79 : vector<1x16xf32>
    %81 = vector.broadcast %71 : vector<1x16xf32> to vector<8x16xf32>
    %82 = arith.subf %67, %81 : vector<8x16xf32>
    %cst_30 = arith.constant 9.99999974E-6 : f32
    %83 = vector.broadcast %cst_30 : f32 to vector<1x16xf32>
    %84 = arith.addf %80, %83 : vector<1x16xf32>
    %85 = math.rsqrt %84 : vector<1x16xf32>
    %86 = vector.broadcast %85 : vector<1x16xf32> to vector<8x16xf32>
    %87 = arith.mulf %82, %86 : vector<8x16xf32>
    %cst_31 = arith.constant 5.000000e-01 : f32
    %88 = vector.broadcast %cst_31 : f32 to vector<8x16xf32>
    %89 = arith.mulf %88, %87 : vector<8x16xf32>
    %90 = math.exp %89 : vector<8x16xf32>
    %91 = arith.mulf %90, %90 : vector<8x16xf32>
    %c0_32 = arith.constant 0 : index
    %c0_33 = arith.constant 0 : index
    %92 = vector.load %arg7[%c0_32, %c0_33] : memref<8x32xf32, #tpu.memory_space<vmem>>, vector<8x32xf32>
    %93 = vector.extract_strided_slice %92 {offsets = [0, 0], sizes = [8, 16], strides = [1, 1]} : vector<8x32xf32> to vector<8x16xf32>
    %94 = arith.mulf %93, %90 : vector<8x16xf32>
    %95 = arith.addf %66, %94 : vector<8x16xf32>
    %96 = vector.extract_strided_slice %92 {offsets = [0, 16], sizes = [8, 16], strides = [1, 1]} : vector<8x32xf32> to vector<8x16xf32>
    %97 = arith.mulf %96, %90 : vector<8x16xf32>
    %98 = arith.addf %66, %97 : vector<8x16xf32>
    %cst_34 = arith.constant dense<0xFF800000> : vector<8xf32>
    %99 = vector.multi_reduction <maximumf>, %95, %cst_34 [1] : vector<8x16xf32> to vector<8xf32>
    %100 = vector.shape_cast %99 : vector<8xf32> to vector<8x1xf32>
    %101 = vector.broadcast %100 : vector<8x1xf32> to vector<8x16xf32>
    %102 = arith.subf %95, %101 : vector<8x16xf32>
    %103 = math.exp %102 : vector<8x16xf32>
    %cst_35 = arith.constant dense<0.000000e+00> : vector<8xf32>
    %104 = vector.multi_reduction <add>, %103, %cst_35 [1] : vector<8x16xf32> to vector<8xf32>
    %105 = vector.shape_cast %104 : vector<8xf32> to vector<8x1xf32>
    %106 = tpu.reciprocal %105 {approx = true} : vector<8x1xf32> -> vector<8x1xf32>
    %107 = arith.mulf %105, %106 : vector<8x1xf32>
    %cst_36 = arith.constant 2.000000e+00 : f32
    %108 = vector.broadcast %cst_36 : f32 to vector<8x1xf32>
    %109 = arith.subf %108, %107 : vector<8x1xf32>
    %110 = arith.mulf %106, %109 : vector<8x1xf32>
    %111 = vector.broadcast %110 : vector<8x1xf32> to vector<8x16xf32>
    %112 = arith.mulf %103, %111 : vector<8x16xf32>
    %cst_37 = arith.constant 5.000000e-01 : f32
    %113 = vector.broadcast %cst_37 : f32 to vector<8x16xf32>
    %114 = arith.mulf %98, %113 : vector<8x16xf32>
    %cst_38 = arith.constant dense<0xFF800000> : vector<8xf32>
    %115 = vector.multi_reduction <maximumf>, %114, %cst_38 [1] : vector<8x16xf32> to vector<8xf32>
    %116 = vector.shape_cast %115 : vector<8xf32> to vector<8x1xf32>
    %117 = vector.broadcast %116 : vector<8x1xf32> to vector<8x16xf32>
    %118 = arith.subf %114, %117 : vector<8x16xf32>
    %119 = math.exp %118 : vector<8x16xf32>
    %cst_39 = arith.constant dense<0.000000e+00> : vector<8xf32>
    %120 = vector.multi_reduction <add>, %119, %cst_39 [1] : vector<8x16xf32> to vector<8xf32>
    %121 = vector.shape_cast %120 : vector<8xf32> to vector<8x1xf32>
    %122 = tpu.reciprocal %121 {approx = true} : vector<8x1xf32> -> vector<8x1xf32>
    %123 = arith.mulf %121, %122 : vector<8x1xf32>
    %cst_40 = arith.constant 2.000000e+00 : f32
    %124 = vector.broadcast %cst_40 : f32 to vector<8x1xf32>
    %125 = arith.subf %124, %123 : vector<8x1xf32>
    %126 = arith.mulf %122, %125 : vector<8x1xf32>
    %127 = vector.broadcast %126 : vector<8x1xf32> to vector<8x16xf32>
    %128 = arith.mulf %119, %127 : vector<8x16xf32>
    %cst_41 = arith.constant 0.000000e+00 : f32
    %129 = vector.broadcast %cst_41 : f32 to vector<8x64xf32>
    %130 = tpu.concatenate %66, %87, %91, %128, %129 in 1 : vector<8x16xf32>, vector<8x16xf32>, vector<8x16xf32>, vector<8x16xf32>, vector<8x64xf32> -> vector<8x128xf32>
    %c0_42 = arith.constant 0 : index
    %c0_43 = arith.constant 0 : index
    %131 = vector.load %arg9[%c0_42, %c0_43] : memref<8x128xf32, #tpu.memory_space<vmem>>, vector<8x128xf32>
    tpu.vector_store %arg9[%c0_42, %c0_43], %130 {strides = array<i32>} : memref<8x128xf32, #tpu.memory_space<vmem>>, vector<8x128xf32>,
    %132 = arith.truncf %112 : vector<8x16xf32> to vector<8x16xbf16>
    %c0_44 = arith.constant 0 : index
    %c0_45 = arith.constant 0 : index
    %133 = vector.load %arg8[%c0_44, %c0_45] : memref<16x128xbf16, #tpu.memory_space<vmem>>, vector<16x128xbf16>
    %cst_46 = arith.constant dense<0.000000e+00> : vector<8x128xf32>
    %134 = tpu.matmul %132, %133, %cst_46 {dimension_numbers = #tpu.dot_dimension_numbers<[1], [0], [0], [1], [0, 0, 1, 1], [], []>} : vector<8x16xbf16>, vector<16x128xbf16>, vector<8x128xf32> -> vector<8x128xf32>
    %cst_47 = arith.constant dense<0.000000e+00> : vector<128xf32>
    %135 = vector.multi_reduction <add>, %134, %cst_47 [0] : vector<8x128xf32> to vector<128xf32>
    %136 = vector.shape_cast %135 : vector<128xf32> to vector<1x128xf32>
    %cst_48 = arith.constant 8.000000e+00 : f32
    %137 = vector.broadcast %cst_48 : f32 to vector<1x128xf32>
    %138 = arith.divf %136, %137 : vector<1x128xf32>
    %139 = arith.mulf %134, %134 : vector<8x128xf32>
    %cst_49 = arith.constant dense<0.000000e+00> : vector<128xf32>
    %140 = vector.multi_reduction <add>, %139, %cst_49 [0] : vector<8x128xf32> to vector<128xf32>
    %141 = vector.shape_cast %140 : vector<128xf32> to vector<1x128xf32>
    %cst_50 = arith.constant 8.000000e+00 : f32
    %142 = vector.broadcast %cst_50 : f32 to vector<1x128xf32>
    %143 = arith.divf %141, %142 : vector<1x128xf32>
    %144 = arith.mulf %138, %138 : vector<1x128xf32>
    %145 = arith.subf %143, %144 : vector<1x128xf32>
    %cst_51 = arith.constant 0.000000e+00 : f32
    %146 = vector.broadcast %cst_51 : f32 to vector<1x128xf32>
    %147 = arith.maximumf %145, %146 : vector<1x128xf32>
    %148 = vector.broadcast %138 : vector<1x128xf32> to vector<8x128xf32>
    %149 = arith.subf %134, %148 : vector<8x128xf32>
    %cst_52 = arith.constant 9.99999974E-6 : f32
    %150 = vector.broadcast %cst_52 : f32 to vector<1x128xf32>
    %151 = arith.addf %147, %150 : vector<1x128xf32>
    %152 = math.rsqrt %151 : vector<1x128xf32>
    %153 = vector.broadcast %152 : vector<1x128xf32> to vector<8x128xf32>
    %154 = arith.mulf %149, %153 : vector<8x128xf32>
    %cst_53 = arith.constant dense<0xFF800000> : vector<8xf32>
    %155 = vector.multi_reduction <maximumf>, %154, %cst_53 [1] : vector<8x128xf32> to vector<8xf32>
    %156 = vector.shape_cast %155 : vector<8xf32> to vector<8x1xf32>
    %157 = vector.broadcast %156 : vector<8x1xf32> to vector<8x128xf32>
    %158 = arith.subf %154, %157 : vector<8x128xf32>
    %159 = math.exp %158 : vector<8x128xf32>
    %cst_54 = arith.constant dense<0.000000e+00> : vector<8xf32>
    %160 = vector.multi_reduction <add>, %159, %cst_54 [1] : vector<8x128xf32> to vector<8xf32>
    %161 = vector.shape_cast %160 : vector<8xf32> to vector<8x1xf32>
    %162 = tpu.reciprocal %161 {approx = true} : vector<8x1xf32> -> vector<8x1xf32>
    %163 = arith.mulf %161, %162 : vector<8x1xf32>
    %cst_55 = arith.constant 2.000000e+00 : f32
    %164 = vector.broadcast %cst_55 : f32 to vector<8x1xf32>
    %165 = arith.subf %164, %163 : vector<8x1xf32>
    %166 = arith.mulf %162, %165 : vector<8x1xf32>
    %167 = vector.broadcast %166 : vector<8x1xf32> to vector<8x128xf32>
    %168 = arith.mulf %159, %167 : vector<8x128xf32>
    %c0_56 = arith.constant 0 : index
    %c0_57 = arith.constant 0 : index
    %169 = vector.load %arg10[%c0_56, %c0_57] : memref<8x128xf32, #tpu.memory_space<vmem>>, vector<8x128xf32>
    tpu.vector_store %arg10[%c0_56, %c0_57], %168 {strides = array<i32>} : memref<8x128xf32, #tpu.memory_space<vmem>>, vector<8x128xf32>,
    %cst_58 = arith.constant 5.000000e-01 : f32
    %170 = vector.broadcast %cst_58 : f32 to vector<8x128xf32>
    %171 = arith.mulf %154, %170 : vector<8x128xf32>
    %cst_59 = arith.constant 5.000000e-01 : f32
    %172 = vector.broadcast %cst_59 : f32 to vector<8x1xf32>
    %173 = arith.mulf %156, %172 : vector<8x1xf32>
    %174 = vector.broadcast %173 : vector<8x1xf32> to vector<8x128xf32>
    %175 = arith.subf %171, %174 : vector<8x128xf32>
    %176 = math.exp %175 : vector<8x128xf32>
    %cst_60 = arith.constant dense<0.000000e+00> : vector<8xf32>
    %177 = vector.multi_reduction <add>, %176, %cst_60 [1] : vector<8x128xf32> to vector<8xf32>
    %178 = vector.shape_cast %177 : vector<8xf32> to vector<8x1xf32>
    %179 = tpu.reciprocal %178 {approx = true} : vector<8x1xf32> -> vector<8x1xf32>
    %180 = arith.mulf %178, %179 : vector<8x1xf32>
    %cst_61 = arith.constant 2.000000e+00 : f32
    %181 = vector.broadcast %cst_61 : f32 to vector<8x1xf32>
    %182 = arith.subf %181, %180 : vector<8x1xf32>
    %183 = arith.mulf %179, %182 : vector<8x1xf32>
    %184 = vector.broadcast %183 : vector<8x1xf32> to vector<8x128xf32>
    %185 = arith.mulf %176, %184 : vector<8x128xf32>
    %c0_62 = arith.constant 0 : index
    %c0_63 = arith.constant 0 : index
    %186 = vector.load %arg11[%c0_62, %c0_63] : memref<8x128xf32, #tpu.memory_space<vmem>>, vector<8x128xf32>
    tpu.vector_store %arg11[%c0_62, %c0_63], %185 {strides = array<i32>} : memref<8x128xf32, #tpu.memory_space<vmem>>, vector<8x128xf32>,
    return
  }
}

</mosaic_0001>

<bundles_post_ra>
// kernel: tpu_custom_call.1
= control target key start
LH: loop header
LB: loop body
LE: loop exit
PB: predicated region body
PF: predicated region fallthrough
CT: control target
= control target key end

     0   :  { %17 = vsyncpa [#allocation3], 0  ;;  %s1088_s0 = inlined_call_operand.hbm [shape: bf16[8,64], index: 0, kind: input, shape index: {}]   ;;  %s1089_s1 = inlined_call_operand.vmem [shape: bf16[64,64], index: 1, kind: input, shape index: {}]   ;;  %s1090_s2 = inlined_call_operand.vmem [shape: f32[1,64], index: 2, kind: input, shape index: {}]   ;;  %s1091_s3 = inlined_call_operand.hbm [shape: bf16[64,64], index: 3, kind: input, shape index: {}]   ;;  %s1092_s4 = inlined_call_operand.vmem [shape: f32[1,64], index: 4, kind: input, shape index: {}]   ;;  %s1093_s5 = inlined_call_operand.vmem [shape: bf16[64,32], index: 5, kind: input, shape index: {}]   ;;  %s1094_s6 = inlined_call_operand.vmem [shape: f32[1,32], index: 6, kind: input, shape index: {}]   ;;  %s1095_s7 = inlined_call_operand.vmem [shape: f32[8,32], index: 7, kind: input, shape index: {}]   ;;  %s1096_s8 = inlined_call_operand.vmem [shape: bf16[16,128], index: 8, kind: input, shape index: {}]   ;;  %s1097_s9 = inlined_call_operand.hbm [shape: f32[8,128], index: 9, kind: output, shape index: {0}]   ;;  %s1098_s10 = inlined_call_operand.hbm [shape: f32[8,128], index: 10, kind: output, shape index: {1}]   ;;  %s1099_s11 = inlined_call_operand.hbm [shape: f32[8,128], index: 11, kind: output, shape index: {2}]  }
   0x1   :  { %18 = vsyncpa [#allocation6], 0 }
   0x2   :  { %19 = vsyncpa [#allocation4], 0 }
   0x3   :  { %20 = vsyncpa [#allocation9], 0  ;;  %s858_s17 = smov [#allocation2]   ;;  %s859_s19 = smov [#allocation5]  }
   0x4   :  { %s27_s18 = sshll.u32 %s858_s17, 4  ;;  %s40_s20 = sshll.u32 %s859_s19, 4  ;;  %s28_s18 = int_to_ptr.vmem [resolvable:$true] %s27_s18  ;;  %s930_s20 = int_to_ptr.vmem [resolvable:$true] %s40_s20 }
   0x5   :  { %s740_s23 = scalar_lea.hbm %s1088_s0, 64 }
   0x6   :  { %p741_p0 = scmp.ne.s32.totalorder %s1088_s0, %s740_s23  ;;  %p744_p1 = scmp.lt.u32.totalorder %s740_s23, %s1088_s0 }
   0x8   :  { %p746_p2 = pnand %p744_p1, %p741_p0 }
   0xa   :  { %749 = shalt.err (!%p746_p2)
}
   0xb   :  { %s750_s28 = scalar_lea.vmem %s28_s18, 64  ;;  %p755_p4 = scmp.lt.s32.totalorder %s28_s18, %s28_s18 }
   0xc   :  { %p751_p3 = scmp.ne.s32.totalorder %s28_s18, %s750_s28  ;;  %p756_p5 = scmp.lt.s32.totalorder %s750_s28, %s750_s28 }
   0xe   :  { %p757_p6 = por %p756_p5, %p755_p4 }
  0x10   :  { %p758_p7 = pnand %p757_p6, %p751_p3 }
  0x12   :  { %761 = shalt.err (!%p758_p7)
}
  0x13   :  { %30 = dma.hbm_to_vmem [thread:$0]  %s1088_s0, 64, %s28_s18, [#allocation3]  }
  0x14   :  { %s762_s14 = scalar_lea.hbm %s1091_s3, 512 }
  0x15   :  { %p763_p8 = scmp.ne.s32.totalorder %s1091_s3, %s762_s14  ;;  %p766_p9 = scmp.lt.u32.totalorder %s762_s14, %s1091_s3 }
  0x17   :  { %p768_p10 = pnand %p766_p9, %p763_p8 }
  0x19   :  { %771 = shalt.err (!%p768_p10)
}
  0x1a   :  { %s772_s21 = scalar_lea.vmem %s930_s20, 512  ;;  %p777_p12 = scmp.lt.s32.totalorder %s930_s20, %s930_s20 }
  0x1b   :  { %p773_p11 = scmp.ne.s32.totalorder %s930_s20, %s772_s21  ;;  %p778_p13 = scmp.lt.s32.totalorder %s772_s21, %s772_s21 }
  0x1d   :  { %p779_p0 = por %p778_p13, %p777_p12 }
  0x1f   :  { %p780_p1 = pnand %p779_p0, %p773_p11 }
  0x21   :  { %783 = shalt.err (!%p780_p1)
}
  0x22   :  { %s860_s0 = smov 64   ;;  %s861_s18 = smov 4  }
  0x23   :  { %46 = dma.hbm_to_vmem [thread:$0]  %s1091_s3, 512, %s930_s20, [#allocation6], %s860_s0, %s860_s0, %s861_s18  }
  0x24   :  { %850 = dma.done.wait [#allocation3], 64  }
  0x25   :  { %851 = vsyncadd [#allocation3], 4294967232 }
  0x26   :  { %852 = dma.done.wait [#allocation6], 512  }
  0x27   :  { %853 = vsyncadd [#allocation6], 4294966784  ;;  %v862_v0 = vmov 0.0   ;;  %vm863_vm0 = vmmov 0   ;;  %v695_v1 = vld [vmem:[%s1089_s1] sm:$0xff]   ;;  %v696_v2 = vld [vmem:[%s1089_s1 + $0x8] sm:$0xff]  }
  0x28   :  { %641 = vmatprep.subr.bf16.mxu0 %v862_v0  ;;  %649 = vmatprep.mubr.msk.bf16.mxu0 %vm863_vm0, %v862_v0  ;;  %v697_v3 = vld [vmem:[%s1089_s1 + $0x10] sm:$0xff]   ;;  %v698_v4 = vld [vmem:[%s1089_s1 + $0x18] sm:$0xff]   ;;  %v64_v5 = vld [vmem:[#allocation2] sm:$0xf]  ;;  %vm104_vm1 = vcmask 523264   ;;  %vm350_vm6 = vcmask 130048  }
  0x29   :  { %653 = vmatprep.subr.bf16.mxu1 %v862_v0  ;;  %661 = vmatprep.mubr.msk.bf16.mxu1 %vm863_vm0, %v862_v0  ;;  %v699_v6 = vld [vmem:[#allocation5] sm:$0xff]   ;;  %v700_v7 = vld [vmem:[#allocation5 + $0x8] sm:$0xff]   ;;  %v701_v8 = vld [vmem:[#allocation5 + $0x10] sm:$0xff]   ;;  %vm376_vm7 = vcmask 261248   ;;  %s866_s24 = smov 16   ;;  %vm455_vm8 = vcmask 261120  }
  0x2a   :  { %642 = vmatpush3.bf16.msra.mxu0 %v695_v1  ;;  %654 = vmatpush3.bf16.msra.mxu1 %v699_v6  ;;  %v702_v9 = vld [vmem:[#allocation5 + $0x18] sm:$0xff]   ;;  %v704_v33 = vld [vmem:[%s1093_s5 + $0x8] sm:$0xff]   ;;  %v705_v34 = vld [vmem:[%s1093_s5 + $0x10] sm:$0xff]   ;;  %vm457_vm9 = vcmask 392192   ;;  %s867_s25 = smov [#allocation7]  }
  0x2b   :  { %643 = vmatprep.subr.bf16.mxu0 %v862_v0  ;;  %655 = vmatprep.subr.bf16.mxu1 %v862_v0  ;;  %v604_v10 = vld [vmem:[%s1090_s2] ss:$0 sm:$0xff]  ;;  %v706_v35 = vld [vmem:[%s1093_s5 + $0x18] sm:$0xff]   ;;  %s567_s3 = sshll.u32 %s867_s25, 4  ;;  %s568_s3 = int_to_ptr.vmem [resolvable:$true] %s567_s3 }
  0x2c   :  { %v703_v32 = vld [vmem:[%s1093_s5] sm:$0xff]   ;;  %s784_s20 = scalar_lea.vmem %s568_s3, 128  ;;  %p789_p3 = scmp.lt.s32.totalorder %s568_s3, %s568_s3 }
  0x2d   :  { %v610_v36 = vld [vmem:[%s1092_s4] ss:$0 sm:$0xff]  ;;  %p785_p2 = scmp.ne.s32.totalorder %s568_s3, %s784_s20  ;;  %p790_p4 = scmp.lt.s32.totalorder %s784_s20, %s784_s20 }
  0x2e   :  { %644 = vmatpush3.bf16.msra.mxu0 %v696_v2  ;;  %656 = vmatpush3.bf16.msra.mxu1 %v700_v7  ;;  %v616_v58 = vld [vmem:[%s1094_s6] ss:$0 sm:$0xff]  ;;  %s864_s6 = smov 112  }
  0x2f   :  { %645 = vmatprep.subr.bf16.mxu0 %v862_v0  ;;  %657 = vmatprep.subr.bf16.mxu1 %v862_v0  ;;  %p791_p5 = por %p790_p4, %p789_p3 }
  0x31   :  { %p792_p6 = pnand %p791_p5, %p785_p2 }
  0x32   :  { %646 = vmatpush3.bf16.msra.mxu0 %v697_v3  ;;  %658 = vmatpush3.bf16.msra.mxu1 %v701_v8 }
  0x33   :  { %647 = vmatprep.subr.bf16.mxu0 %v862_v0  ;;  %659 = vmatprep.subr.bf16.mxu1 %v862_v0 }
  0x36   :  { %648 = vmatpush3.bf16.msra.mxu0 %v698_v4  ;;  %660 = vmatpush3.bf16.msra.mxu1 %v702_v9 }
  0x37   :  { %665 = vmatprep.subr.bf16.mxu0 %v862_v0  ;;  %677 = vmatprep.subr.bf16.mxu1 %v862_v0 }
  0x39   :  { %650 = vmatmul.mubr.msk.bf16.vlgmr.msra.gmra.mrb[0].mxu0 %vm104_vm1, %v64_v5 }
  0x3a   :  { %673 = vmatprep.mubr.msk.bf16.mxu0 %vm863_vm0, %v862_v0  ;;  %666 = vmatpush3.bf16.msra.mxu0 %v703_v32 }
  0x3b   :  { %667 = vmatprep.subr.bf16.mxu0 %v862_v0 }
  0x3e   :  { %668 = vmatpush3.bf16.msra.mxu0 %v704_v33 }
  0x3f   :  { %669 = vmatprep.subr.bf16.mxu0 %v862_v0 }
  0x42   :  { %670 = vmatpush3.bf16.msra.mxu0 %v705_v34 }
  0x43   :  { %671 = vmatprep.subr.bf16.mxu0 %v862_v0 }
  0x46   :  { %672 = vmatpush3.bf16.msra.mxu0 %v706_v35 }
 0x10c   :  { %v142_v11 = vpop.f32.mrb[0].mxu0 }
 0x10d   :  { %v143_v12 = vadd.f32 %v604_v10, %v142_v11  ;;  %v651_v13 = vpop.f32.mrb[1].mxu0 }
 0x10e   :  { %v145_v14 = vpop.f32.mrb[2].mxu0 }
 0x10f   :  { %v151_v15 = vand.u32 2147483647, %v143_v12  ;;  %v652_v16 = vpop.f32.mrb[3].mxu0  ;;  %v148_v27 = vmax.f32 %v143_v12, 0.0  ;;  %vm149_vm3 = vcmp.ne.f32.partialorder %v143_v12, %v143_v12 }
 0x111   :  { %v152_v17 = vsub.f32 0.0, %v151_v15 }
 0x113   :  { %v153_v18 = vmul.f32 1.442695, %v152_v17 }
 0x115   :  { %708 = vpow2.f32 %v153_v18 }
 0x11f   :  { %v709_v19 = vpop.eup %708 }
 0x120   :  { %v155_v20 = vadd.f32 1.0, %v709_v19  ;;  %v158_v21 = vmul.f32 -0.5, %v709_v19  ;;  %v161_v23 = vand.u32 2147483647, %v709_v19 }
 0x122   :  { %710 = vlog2.f32 %v155_v20  ;;  %v159_v22 = vadd.f32 1.0, %v158_v21  ;;  %vm162_vm2 = vcmp.lt.f32.partialorder %v161_v23, 0.0004427343 }
 0x124   :  { %v160_v26 = vmul.f32 %v709_v19, %v159_v22 }
 0x12c   :  { %v711_v24 = vpop.eup %710 }
 0x12d   :  { %v157_v25 = vmul.f32 0.6931472, %v711_v24 }
 0x12f   :  { %v163_v28 = vsel %vm162_vm2, %v160_v26, %v157_v25 }
 0x130   :  { %v164_v29 = vadd.f32 %v163_v28, %v148_v27 }
 0x132   :  { %v165_v30 = vsel %vm149_vm3, %v143_v12, %v164_v29 }
 0x133   :  { %v166_v31 = vpack.c.bf16 %v165_v30, %v165_v30 }
 0x135   :  { %662 = vmatmul.mubr.msk.bf16.vlgmr.msra.gmra.mrb[0].mxu1 %vm104_vm1, %v166_v31 }
 0x136   :  { %679 = vmatprep.mubr.msk.bf16.mxu1 %vm863_vm0, %v862_v0 }
 0x208   :  { %v243_v37 = vpop.f32.mrb[0].mxu1 }
 0x209   :  { %v244_v38 = vadd.f32 %v610_v36, %v243_v37  ;;  %v663_v39 = vpop.f32.mrb[1].mxu1 }
 0x20a   :  { %v246_v40 = vpop.f32.mrb[2].mxu1 }
 0x20b   :  { %v252_v41 = vand.u32 2147483647, %v244_v38  ;;  %v664_v42 = vpop.f32.mrb[3].mxu1  ;;  %v249_v53 = vmax.f32 %v244_v38, 0.0  ;;  %vm250_vm5 = vcmp.ne.f32.partialorder %v244_v38, %v244_v38 }
 0x20d   :  { %v253_v43 = vsub.f32 0.0, %v252_v41 }
 0x20f   :  { %v254_v44 = vmul.f32 1.442695, %v253_v43 }
 0x211   :  { %712 = vpow2.f32 %v254_v44 }
 0x21b   :  { %v713_v45 = vpop.eup %712 }
 0x21c   :  { %v256_v46 = vadd.f32 1.0, %v713_v45  ;;  %v259_v47 = vmul.f32 -0.5, %v713_v45  ;;  %v262_v49 = vand.u32 2147483647, %v713_v45 }
 0x21e   :  { %714 = vlog2.f32 %v256_v46  ;;  %v260_v48 = vadd.f32 1.0, %v259_v47  ;;  %vm263_vm4 = vcmp.lt.f32.partialorder %v262_v49, 0.0004427343 }
 0x220   :  { %v261_v52 = vmul.f32 %v713_v45, %v260_v48 }
 0x228   :  { %v715_v50 = vpop.eup %714 }
 0x229   :  { %v258_v51 = vmul.f32 0.6931472, %v715_v50  ;;  %v404_v50 = vld [vmem:[%s1095_s7] sm:$0xff] }
 0x22b   :  { %v264_v54 = vsel %vm263_vm4, %v261_v52, %v258_v51 }
 0x22c   :  { %v265_v55 = vadd.f32 %v264_v54, %v249_v53 }
 0x22e   :  { %v266_v56 = vsel %vm250_vm5, %v244_v38, %v265_v55 }
 0x22f   :  { %v267_v57 = vpack.c.bf16 %v266_v56, %v266_v56 }
 0x231   :  { %674 = vmatmul.mubr.msk.bf16.vlgmr.msra.gmra.mrb[4].mxu0 %vm104_vm1, %v267_v57 }
 0x304   :  { %v344_v59 = vpop.f32.mrb[4].mxu0 }
 0x305   :  { %v345_v60 = vadd.f32 %v616_v58, %v344_v59  ;;  %v675_v61 = vpop.f32.mrb[5].mxu0 }
 0x306   :  { %v347_v62 = vpop.f32.mrb[6].mxu0  ;;  %v707_v61 = vld [vmem:[%s1096_s8] sm:$0xff]   ;;  %s865_s8 = smov 48  }
 0x307   :  { %v351_v63 = vsel %vm350_vm6, %v345_v60, 0.0  ;;  %v360_v0 = vmul.f32 %v345_v60, %v345_v60  ;;  %v377_v1 = vsel %vm376_vm7, %v345_v60, 0.0  ;;  %v676_v2 = vpop.f32.mrb[7].mxu0  ;;  %678 = vmatpush3.bf16.msra.mxu1 %v707_v61 }
 0x308   :  { %v352_v3 = vrot.slane %v351_v63, 4  ;;  %v378_v4 = vrot.slane %v377_v1, 4 }
 0x309   :  { %v361_v5 = vsel %vm350_vm6, %v360_v0, 0.0  ;;  %v385_v6 = vsel %vm376_vm7, %v360_v0, 0.0 }
 0x30a   :  { %v353_v7 = vadd.f32 %v352_v3, %v351_v63  ;;  %v362_v8 = vrot.slane %v361_v5, 4  ;;  %v379_v9 = vadd.f32 %v378_v4, %v377_v1  ;;  %v386_v10 = vrot.slane %v385_v6, 4 }
 0x30c   :  { %v363_v11 = vadd.f32 %v362_v8, %v361_v5  ;;  %v380_v12 = vrot.slane %v379_v9, 2  ;;  %v387_v13 = vadd.f32 %v386_v10, %v385_v6  ;;  %v354_v14 = vrot.slane %v353_v7, 2 }
 0x30e   :  { %v364_v15 = vrot.slane %v363_v11, 2  ;;  %v381_v16 = vadd.f32 %v380_v12, %v379_v9  ;;  %v388_v17 = vrot.slane %v387_v13, 2  ;;  %v355_v18 = vadd.f32 %v354_v14, %v353_v7 }
 0x310   :  { %v365_v19 = vadd.f32 %v364_v15, %v363_v11  ;;  %v382_v20 = vrot.slane %v381_v16, 1  ;;  %v389_v21 = vadd.f32 %v388_v17, %v387_v13  ;;  %v356_v22 = vrot.slane %v355_v18, 1 }
 0x312   :  { %v383_v23 = vadd.f32 %v382_v20, %v381_v16  ;;  %v390_v24 = vrot.slane %v389_v21, 1  ;;  %v357_v25 = vadd.f32 %v356_v22, %v355_v18  ;;  %v366_v26 = vrot.slane %v365_v19, 1 }
 0x314   :  { %v384_v27 = vmul.f32 0.125, %v383_v23  ;;  %v391_v28 = vadd.f32 %v390_v24, %v389_v21  ;;  %v359_v29 = vmul.f32 0.125, %v357_v25  ;;  %v367_v30 = vadd.f32 %v366_v26, %v365_v19 }
 0x316   :  { %v392_v31 = vmul.f32 0.125, %v391_v28  ;;  %v393_v32 = vmul.f32 %v384_v27, %v384_v27  ;;  %v368_v33 = vmul.f32 0.125, %v367_v30  ;;  %v369_v34 = vmul.f32 %v359_v29, %v359_v29 }
 0x317   :  { %v396_v41 = vsub.f32 %v345_v60, %v384_v27  ;;  %v372_v43 = vsub.f32 %v345_v60, %v359_v29 }
 0x318   :  { %v394_v35 = vsub.f32 %v392_v31, %v393_v32  ;;  %v370_v36 = vsub.f32 %v368_v33, %v369_v34 }
 0x31a   :  { %v395_v37 = vmax.f32 %v394_v35, 0.0  ;;  %v371_v38 = vmax.f32 %v370_v36, 0.0 }
 0x31c   :  { %v397_v39 = vadd.f32 1e-05, %v395_v37  ;;  %v373_v40 = vadd.f32 1e-05, %v371_v38 }
 0x31e   :  { %716 = vrsqrt.f32 %v397_v39 }
 0x31f   :  { %718 = vrsqrt.f32 %v373_v40 }
 0x328   :  { %v717_v42 = vpop.eup %716 }
 0x329   :  { %v719_v44 = vpop.eup %718  ;;  %v1020_v45 = vmul.f32 %v717_v42, %v396_v41 }
 0x32a   :  { %v1022_v46 = vmul.f32 %v719_v44, %v372_v43 }
 0x32b   :  { %v400_v47 = vmul.f32 0.5, %v1020_v45 }
 0x32c   :  { %v454_v61 = vsel %vm350_vm6, %v1022_v46, %v1020_v45 }
 0x32d   :  { %v401_v48 = vmul.f32 1.442695, %v400_v47 }
 0x32f   :  { %720 = vpow2.f32 %v401_v48 }
 0x339   :  { %v1025_v49 = vpop.eup %720 }
 0x33a   :  { %406 = vrot.lane.b32.xlu0 %v1025_v49, %s864_s6  ;;  %v411_v60 = vmul.f32 %v1025_v49, %v404_v50 }
 0x3ac   :  { %v407_v51 = vpop.permute.xlu0 %406 }
 0x3ad   :  { %v409_v52 = vmul.f32 %v407_v51, %v404_v50 }
 0x3af   :  { %v410_v53 = vadd.f32 %v409_v52, %v1022_v46 }
 0x3b1   :  { %v417_v54 = vsel %vm350_vm6, %v410_v53, -inf }
 0x3b2   :  { %418 = vmax.xlane.f32.xlu0 %v417_v54 }
 0x43f   :  { %v419_v55 = vpop.xlane.xlu0 %418 }
 0x440   :  { %v420_v56 = vsub.f32 %v410_v53, %v419_v55 }
 0x442   :  { %v421_v57 = vmul.f32 1.442695, %v420_v56 }
 0x444   :  { %722 = vpow2.f32 %v421_v57 }
 0x44e   :  { %v723_v58 = vpop.eup %722 }
 0x44f   :  { %v423_v59 = vsel %vm350_vm6, %v723_v58, 0.0 }
 0x450   :  { %424 = vadd.xlane.f32.xlu1 %v423_v59 }
 0x461   :  { %413 = vrot.lane.b32.xlu1 %v411_v60, %s864_s6 }
 0x4dd   :  { %v425_v62 = vpop.xlane.xlu1 %424 }
 0x4de   :  { %724 = vrcp.f32 %v425_v62 }
 0x4e1   :  { %v414_v63 = vpop.permute.xlu1 %413 }
 0x4e2   :  { %v416_v0 = vadd.f32 %v414_v63, %v1022_v46 }
 0x4e4   :  { %v431_v1 = vmul.f32 0.5, %v416_v0 }
 0x4e6   :  { %v432_v2 = vsel %vm350_vm6, %v431_v1, -inf }
 0x4e7   :  { %433 = vmax.xlane.f32.xlu1 %v432_v2 }
 0x4e8   :  { %v725_v3 = vpop.eup %724 }
 0x4e9   :  { %v427_v4 = vmul.f32 %v725_v3, %v425_v62 }
 0x4eb   :  { %v428_v5 = vsub.f32 2.0, %v427_v4 }
 0x4ed   :  { %v429_v6 = vmul.f32 %v725_v3, %v428_v5 }
 0x4ef   :  { %v430_v7 = vmul.f32 %v723_v58, %v429_v6  ;;  %v403_v58 = vmul.f32 %v1025_v49, %v1025_v49 }
 0x4f1   :  { %v461_v8 = vpack.c.bf16 %v430_v7, %v430_v7 }
 0x4f3   :  { %680 = vmatmul.mubr.msk.bf16.vlgmr.msra.gmra.mrb[4].mxu1 %vm350_vm6, %v461_v8 }
 0x574   :  { %v434_v27 = vpop.xlane.xlu1 %433 }
 0x575   :  { %v435_v31 = vsub.f32 %v431_v1, %v434_v27 }
 0x577   :  { %v436_v34 = vmul.f32 1.442695, %v435_v31 }
 0x5c6   :  { %v507_v9 = vpop.f32.mrb[4].mxu1 }
 0x5c7   :  { %v513_v10 = vrot.slane %v507_v9, 4  ;;  %v520_v11 = vmul.f32 %v507_v9, %v507_v9  ;;  %v681_v12 = vpop.f32.mrb[5].mxu1 }
 0x5c8   :  { %v510_v13 = vpop.f32.mrb[6].mxu1 }
 0x5c9   :  { %v514_v14 = vadd.f32 %v513_v10, %v507_v9  ;;  %v521_v15 = vrot.slane %v520_v11, 4  ;;  %v682_v16 = vpop.f32.mrb[7].mxu1 }
 0x5cb   :  { %v515_v17 = vrot.slane %v514_v14, 2  ;;  %v522_v18 = vadd.f32 %v521_v15, %v520_v11 }
 0x5cd   :  { %v516_v19 = vadd.f32 %v515_v17, %v514_v14  ;;  %v523_v20 = vrot.slane %v522_v18, 2 }
 0x5cf   :  { %v517_v21 = vrot.slane %v516_v19, 1  ;;  %v524_v22 = vadd.f32 %v523_v20, %v522_v18 }
 0x5d1   :  { %v518_v23 = vadd.f32 %v517_v21, %v516_v19  ;;  %v525_v24 = vrot.slane %v524_v22, 1 }
 0x5d3   :  { %v519_v25 = vmul.f32 0.125, %v518_v23  ;;  %v526_v26 = vadd.f32 %v525_v24, %v524_v22 }
 0x5d5   :  { %v527_v28 = vmul.f32 0.125, %v526_v26  ;;  %v528_v29 = vmul.f32 %v519_v25, %v519_v25  ;;  %v531_v35 = vsub.f32 %v507_v9, %v519_v25 }
 0x5d7   :  { %v529_v30 = vsub.f32 %v527_v28, %v528_v29 }
 0x5d9   :  { %v530_v32 = vmax.f32 %v529_v30, 0.0 }
 0x5db   :  { %v532_v33 = vadd.f32 1e-05, %v530_v32 }
 0x5dd   :  { %726 = vrsqrt.f32 %v532_v33 }
 0x5de   :  { %728 = vpow2.f32 %v436_v34 }
 0x5e7   :  { %v727_v36 = vpop.eup %726 }
 0x5e8   :  { %v534_v37 = vmul.f32 %v727_v36, %v531_v35  ;;  %v729_v38 = vpop.eup %728 }
 0x5e9   :  { %v438_v39 = vsel %vm350_vm6, %v729_v38, 0.0 }
 0x5ea   :  { %535 = vmax.xlane.f32.xlu0 %v534_v37  ;;  %v548_v42 = vmul.f32 0.5, %v534_v37 }
 0x5ee   :  { %439 = vadd.xlane.f32.xlu0 %v438_v39 }
 0x677   :  { %v536_v40 = vpop.xlane.xlu0 %535 }
 0x678   :  { %v537_v41 = vsub.f32 %v534_v37, %v536_v40  ;;  %v549_v43 = vmul.f32 0.5, %v536_v40 }
 0x67a   :  { %v538_v44 = vmul.f32 1.442695, %v537_v41  ;;  %v550_v47 = vsub.f32 %v548_v42, %v549_v43 }
 0x67b   :  { %v440_v48 = vpop.xlane.xlu0 %439 }
 0x67c   :  { %730 = vpow2.f32 %v538_v44  ;;  %v551_v50 = vmul.f32 1.442695, %v550_v47 }
 0x67d   :  { %732 = vrcp.f32 %v440_v48 }
 0x67e   :  { %734 = vpow2.f32 %v551_v50 }
 0x686   :  { %v731_v51 = vpop.eup %730 }
 0x687   :  { %v733_v52 = vpop.eup %732  ;;  %540 = vadd.xlane.f32.xlu0 %v731_v51 }
 0x688   :  { %v442_v53 = vmul.f32 %v733_v52, %v440_v48  ;;  %v1042_v54 = vpop.eup %734 }
 0x68a   :  { %v443_v55 = vsub.f32 2.0, %v442_v53 }
 0x68b   :  { %553 = vadd.xlane.f32.xlu0 %v1042_v54 }
 0x68c   :  { %v444_v56 = vmul.f32 %v733_v52, %v443_v55 }
 0x68e   :  { %v445_v57 = vmul.f32 %v729_v38, %v444_v56 }
 0x690   :  { %451 = vrot.lane.b32.xlu1 %v445_v57, %s865_s8 }
 0x6a1   :  { %447 = vrot.lane.b32.xlu0 %v403_v58, %s866_s24 }
 0x702   :  { %v452_v63 = vpop.permute.xlu1 %451 }
 0x714   :  { %v541_v59 = vpop.xlane.xlu0 %540 }
 0x715   :  { %736 = vrcp.f32 %v541_v59 }
 0x718   :  { %v554_v60 = vpop.xlane.xlu0 %553 }
 0x719   :  { %738 = vrcp.f32 %v554_v60 }
 0x71c   :  { %v448_v62 = vpop.permute.xlu0 %447 }
 0x71d   :  { %v456_v0 = vsel %vm455_vm8, %v454_v61, %v448_v62 }
 0x71e   :  { %v458_v1 = vsel %vm457_vm9, %v456_v0, %v452_v63 }
 0x71f   :  { %v737_v49 = vpop.eup %736  ;;  %v459_v2 = vsel %vm104_vm1, %v458_v1, 0.0 }
 0x720   :  { %v543_v3 = vmul.f32 %v737_v49, %v541_v59  ;;  %460 = vst [vmem:[#allocation7] sm:$0xff] %v459_v2 }
 0x721   :  { %795 = shalt.err (!%p792_p6)
}
 0x722   :  { %s796_s28 = scalar_lea.hbm %s1097_s9, 128 }
 0x723   :  { %p797_p7 = scmp.ne.s32.totalorder %s1097_s9, %s796_s28  ;;  %p800_p8 = scmp.lt.u32.totalorder %s796_s28, %s1097_s9 }
 0x725   :  { %p802_p9 = pnand %p800_p8, %p797_p7 }
 0x727   :  { %805 = shalt.err (!%p802_p9)
}
 0x728   :  { %570 = dma.vmem_to_hbm [thread:$0]  %s568_s3, 128, %s1097_s9, [#allocation4]   ;;  %v544_v45 = vsub.f32 2.0, %v543_v3  ;;  %v739_v46 = vpop.eup %738 }
 0x729   :  { %s868_s14 = smov [#allocation8]   ;;  %v556_v5 = vmul.f32 %v739_v46, %v554_v60  ;;  %s869_s16 = smov [#allocation10]  }
 0x72a   :  { %s577_s15 = sshll.u32 %s868_s14, 4  ;;  %v545_v4 = vmul.f32 %v737_v49, %v544_v45  ;;  %s587_s17 = sshll.u32 %s869_s16, 4  ;;  %s578_s15 = int_to_ptr.vmem [resolvable:$true] %s577_s15  ;;  %s588_s17 = int_to_ptr.vmem [resolvable:$true] %s587_s17 }
 0x72b   :  { %v557_v6 = vsub.f32 2.0, %v556_v5  ;;  %s806_s19 = scalar_lea.vmem %s578_s15, 128  ;;  %p811_p11 = scmp.lt.s32.totalorder %s578_s15, %s578_s15 }
 0x72c   :  { %v546_v7 = vmul.f32 %v731_v51, %v545_v4  ;;  %p807_p10 = scmp.ne.s32.totalorder %s578_s15, %s806_s19  ;;  %p812_p12 = scmp.lt.s32.totalorder %s806_s19, %s806_s19 }
 0x72d   :  { %v558_v8 = vmul.f32 %v739_v46, %v557_v6 }
 0x72e   :  { %547 = vst [vmem:[#allocation8] sm:$0xff] %v546_v7  ;;  %p813_p13 = por %p812_p12, %p811_p11 }
 0x730   :  { %p814_p0 = pnand %p813_p13, %p807_p10 }
 0x732   :  { %817 = shalt.err (!%p814_p0)
}
 0x733   :  { %s818_s0 = scalar_lea.hbm %s1098_s10, 128 }
 0x734   :  { %p819_p1 = scmp.ne.s32.totalorder %s1098_s10, %s818_s0  ;;  %p822_p2 = scmp.lt.u32.totalorder %s818_s0, %s1098_s10 }
 0x736   :  { %p824_p3 = pnand %p822_p2, %p819_p1 }
 0x738   :  { %827 = shalt.err (!%p824_p3)
}
 0x739   :  { %580 = dma.vmem_to_hbm [thread:$0]  %s578_s15, 128, %s1098_s10, [#allocation9]   ;;  %v559_v9 = vmul.f32 %v1042_v54, %v558_v8 }
 0x73a   :  { %s828_s7 = scalar_lea.vmem %s588_s17, 128  ;;  %p833_p5 = scmp.lt.s32.totalorder %s588_s17, %s588_s17 }
 0x73b   :  { %560 = vst [vmem:[#allocation10] sm:$0xff] %v559_v9  ;;  %p829_p4 = scmp.ne.s32.totalorder %s588_s17, %s828_s7  ;;  %p834_p6 = scmp.lt.s32.totalorder %s828_s7, %s828_s7 }
 0x73d   :  { %p835_p7 = por %p834_p6, %p833_p5 }
 0x73f   :  { %p836_p8 = pnand %p835_p7, %p829_p4 }
 0x741   :  { %839 = shalt.err (!%p836_p8)
}
 0x742   :  { %s840_s25 = scalar_lea.hbm %s1099_s11, 128 }
 0x743   :  { %p841_p9 = scmp.ne.s32.totalorder %s1099_s11, %s840_s25  ;;  %p844_p10 = scmp.lt.u32.totalorder %s840_s25, %s1099_s11 }
 0x745   :  { %p846_p11 = pnand %p844_p10, %p841_p9 }
 0x747   :  { %849 = shalt.err (!%p846_p11)
}
 0x748   :  { %590 = dma.vmem_to_hbm [thread:$0]  %s588_s17, 128, %s1099_s11, [#allocation9]  }
 0x749   :  { %854 = dma.done.wait [#allocation4], 128  }
 0x74a   :  { %855 = vsyncadd [#allocation4], 4294967168 }
 0x74b   :  { %856 = dma.done.wait [#allocation9], 256  }
 0x74c   :  { %857 = vsyncadd [#allocation9], 4294967040 }
 0x74d   :  { %600 = vsyncpa [#allocation3], 1 }
 0x74e   :  { %601 = vsyncpa [#allocation6], 1 }
 0x74f   :  { %602 = vsyncpa [#allocation4], 1 }
 0x750   :  { %603 = vsyncpa [#allocation9], 1 }

</bundles_post_ra>
